<compile_context>
chip_gen: v7x
topology: tpu7x:2x2x1
jax: 0.10.0
libtpu: 0.0.40
codegen_flags: <defaults>
</compile_context>

<pallas_src>
import jax
import jax.numpy as jnp
from jax.experimental import pallas as pl
from jax.experimental.pallas import tpu as pltpu


def _dma_passthrough_kernel(in_hbm, out_hbm, sem):
    # Whole-array async copy HBM -> HBM.  No VMEM staging, no vld/vst work.
    cp = pltpu.make_async_copy(in_hbm, out_hbm, sem)
    cp.start()
    cp.wait()


def _pallas_passthrough(x):
    """Identity realized as a single whole-array DMA (only if a kernel is needed)."""
    if x.size == 0:
        return x  # degenerate empty tensor; nothing to copy
    return pl.pallas_call(
        _dma_passthrough_kernel,
        out_shape=jax.ShapeDtypeStruct(x.shape, x.dtype),
        in_specs=[pl.BlockSpec(memory_space=pl.ANY)],
        out_specs=pl.BlockSpec(memory_space=pl.ANY),
        scratch_shapes=[pltpu.SemaphoreType.DMA],
    )(x)


class FieldComponent:
    """JAX/Pallas port of the abstract FieldComponent base class.

    Args:
        in_dim: Input dimension to module.
        out_dim: Output dimension to module.
        use_pallas_copy: if True, route the pass-through through the Pallas
            whole-array DMA kernel (e.g. to keep a graph boundary).  Default
            False: `forward` returns the input directly (the fastest and
            recommended realization of the abstract base class).
    """

    def __init__(self, in_dim=None, out_dim=None, use_pallas_copy=False):
        self.in_dim = in_dim
        self.out_dim = out_dim
        self.use_pallas_copy = use_pallas_copy

    def build_nn_modules(self):
        """No torch.nn members exist in the base class; nothing to build."""

    def set_in_dim(self, in_dim):
        if in_dim <= 0:
            raise ValueError("Input dimension should be greater than zero")
        self.in_dim = in_dim

    def get_out_dim(self):
        if self.out_dim is None:
            raise ValueError("Output dimension has not been set")
        return self.out_dim

    def forward(self, in_tensor):
        # Base-class forward is abstract in PyTorch.  Minimal concrete
        # realization: pass-through.  Per perf review, the default path
        # returns the input with no kernel launch and no HBM traffic.
        if self.in_dim is not None and in_tensor.shape[-1] != self.in_dim:
            raise ValueError("Input tensor last dim does not match in_dim")
        if self.use_pallas_copy:
            return _pallas_passthrough(in_tensor)
        return in_tensor

    __call__ = forward


if __name__ == "__main__":
    key = jax.random.PRNGKey(0)

    # Small shape consistent with a field-component input.
    B, C, H, W = 2, 4, 16, 16
    x = jax.random.normal(key, (B, C, H, W), dtype=jnp.float32)

    # Default (recommended) path: pure identity, no kernel launch.
    comp = FieldComponent(in_dim=W, out_dim=W)
    comp.build_nn_modules()  # no-op, mirrors the PyTorch API
    assert comp.get_out_dim() == W
    y = comp(x)
    jax.block_until_ready(y)
    assert y.shape == x.shape and y.dtype == x.dtype
    assert bool(jnp.all(y == x))

    # Pallas-kernel path: single whole-array HBM DMA (graph-boundary variant).
    comp_k = FieldComponent(in_dim=W, out_dim=W, use_pallas_copy=True)
    yk = comp_k(x)
    jax.block_until_ready(yk)
    assert yk.shape == x.shape and yk.dtype == x.dtype
    assert bool(jnp.allclose(yk, x))

    # bf16 + non-128-multiple last dim: the DMA path needs no padding at all.
    comp_odd = FieldComponent(in_dim=63, out_dim=63, use_pallas_copy=True)
    x_odd = jax.random.normal(jax.random.PRNGKey(1), (8, 63), dtype=jnp.bfloat16)
    y_odd = comp_odd(x_odd)
    jax.block_until_ready(y_odd)
    assert y_odd.shape == x_odd.shape and y_odd.dtype == x_odd.dtype
    assert bool(jnp.all(y_odd == x_odd))

    print("KERNEL_OK")
</pallas_src>

<mosaic_0001>
module attributes {stable_mosaic.version = 11 : i64} {
  func.func @_dma_passthrough_kernel(%arg0: memref<2x4x16x16xf32, #tpu.memory_space<any>>, %arg1: memref<2x4x16x16xf32, #tpu.memory_space<any>>, %arg2: memref<!tpu.dma_semaphore, #tpu.memory_space<semaphore_mem>>) attributes {dimension_semantics = [], scalar_prefetch = 0 : i64, scratch_operands = 1 : i64, tpu.core_type = #tpu.core_type<tc>} {
    tpu.enqueue_dma source(%arg0 : memref<2x4x16x16xf32, #tpu.memory_space<any>>) target(%arg1 : memref<2x4x16x16xf32, #tpu.memory_space<any>>) target_semaphore(%arg2 : memref<!tpu.dma_semaphore, #tpu.memory_space<semaphore_mem>>)
    tpu.wait_dma2 semaphore(%arg2 : memref<!tpu.dma_semaphore, #tpu.memory_space<semaphore_mem>>) src(%arg0 : memref<2x4x16x16xf32, #tpu.memory_space<any>>) dst(%arg1 : memref<2x4x16x16xf32, #tpu.memory_space<any>>)
    return
  }
}

</mosaic_0001>

<bundles_post_ra>
// kernel: tpu_custom_call.1
= control target key start
LH: loop header
LB: loop body
LE: loop exit
PB: predicated region body
PF: predicated region fallthrough
CT: control target
= control target key end

     0   :  { %s36_s6 = smov [#allocation2]   ;;  %s37_s7 = smov [#allocation3]   ;;  %s55_s0 = inlined_call_operand.hbm [shape: f32[2,4,16,16], index: 0, kind: input, shape index: {}]   ;;  %s56_s1 = inlined_call_operand.hbm [shape: f32[2,4,16,16], index: 1, kind: output, shape index: {}]  }
   0x1   :  { %s38_s8 = smov 0  }
   0x2   :  { %18 = dma.general %s55_s0, 2048, %s56_s1, %s36_s6, %s37_s7, [#allocation4], %s38_s8, 0  }
   0x3   :  { %34 = dma.done.wait [#allocation2], 2048 }
   0x4   :  { %35 = vsyncadd [#allocation2], 4294965248 }
   0x5   :  { %24 = vsyncmov [#allocation2] }
   0x8   :  { %s25_s13 = vpop.sfrf %24 }
   0x9   :  { %p30_p0 = scmp.ne.s32.totalorder %s25_s13, 0 }
   0xb   :  { %29 = shalt.err (%p30_p0)  }

</bundles_post_ra>
